<compile_context>
chip_gen: v7x
topology: tpu7x:2x2x1
jax: 0.10.0
libtpu: 0.0.40
codegen_flags: <defaults>
</compile_context>

<pallas_src>
import functools

import jax
import jax.numpy as jnp
from jax.experimental import pallas as pl
from jax.experimental.pallas import tpu as pltpu


# --------------------------------------------------------------------------- #
# Kernel
# --------------------------------------------------------------------------- #
def _offpg_kernel(x_ref, w1_ref, b1_ref, w2_ref, b2_ref, wc_ref, bc_ref, q_ref,
                  *, epilogue_in_compute_dtype):
    """One batch tile of the OffPGCritic MLP."""
    cd = w1_ref.dtype            # matmul operand dtype (bf16 fast path, f32 check path)
    x = x_ref[...].astype(cd)    # no-op if the caller already feeds bf16 activations

    def _relu_cast(acc_f32):
        # relu(cast(x)) == cast(relu(x)) for bf16, so this is purely a perf choice:
        # the bf16 epilogue halves VALU/vreg pressure on v6e/v7x; keep f32 on v5e.
        if epilogue_in_compute_dtype:
            return jnp.maximum(acc_f32.astype(cd), 0.0)
        return jnp.maximum(acc_f32, 0.0).astype(cd)

    h1 = _relu_cast(
        jnp.dot(x, w1_ref[...], preferred_element_type=jnp.float32) + b1_ref[...])
    h2 = _relu_cast(
        jnp.dot(h1, w2_ref[...], preferred_element_type=jnp.float32) + b2_ref[...])

    # Fused (fc3 + fc_v) head: q = a + v == h2 @ (w3 + wv) + (b3 + bv).
    q = jnp.dot(h2, wc_ref[...], preferred_element_type=jnp.float32) + bc_ref[...]
    q_ref[...] = q.astype(q_ref.dtype)


# --------------------------------------------------------------------------- #
# Wrapper helpers
# --------------------------------------------------------------------------- #
def prepare_params(params, *, compute_dtype=jnp.bfloat16):
    """One-time weight prep (hoisted out of the per-forward path).

    Fuses fc_v into fc3 (exact math: v is added to every action column) and casts
    the matmul operands to the MXU-friendly dtype.  Biases stay f32 (they are
    added to the f32 accumulator inside the kernel).
    """
    w1, b1, w2, b2, wv, bv, w3, b3 = params
    wc = (w3 + wv).astype(compute_dtype)   # (hidden, n_actions) + (hidden, 1) broadcast
    bc = b3 + bv                           # (1, n_actions)      + (1, 1)      broadcast
    return (w1.astype(compute_dtype), b1, w2.astype(compute_dtype), b2, wc, bc)


def _choose_batch_tile(batch, tm_max):
    """Pick the per-grid-step batch tile (rows).

    * batch <= 256: one tile (floored to a sublane multiple; any ragged tail is
      handled by Pallas edge-block masking).
    * batch  > 256: tiles are multiples of 256 rows, capped at tm_max, and sized
      so the grid has >= 2 steps (v7x megacore sharding via "parallel").
    """
    if batch <= 8:
        return batch
    if batch <= 256:
        return 8 * (batch // 8)
    tm_max = max(256, (tm_max // 256) * 256)
    return min(tm_max, 256 * max(1, batch // 512))


def _const_spec(shape):
    """Constant-index operand (weights / biases): single-buffer it.

    Pallas already skips re-DMA when the block index doesn't change; Buffered(1)
    additionally avoids allocating a second VMEM buffer for it.
    """
    index_map = lambda i: (0, 0)
    try:
        return pl.BlockSpec(shape, index_map, pipeline_mode=pl.Buffered(1))
    except TypeError:  # older jax without pipeline_mode on BlockSpec
        return pl.BlockSpec(shape, index_map)


def _epilogue_in_compute_dtype(compute_dtype):
    """bf16 bias/ReLU epilogue only where the VPU supports bf16 (v6e/v7x, not v5e)."""
    if compute_dtype != jnp.bfloat16:
        return False
    try:
        kind = jax.devices()[0].device_kind.lower()
    except Exception:
        kind = ""
    if "v5 lite" in kind or "v5lite" in kind or "v5e" in kind:
        return False
    return True


def offpg_critic_forward(x, prepared, *, tm=1024):
    """x: (B, input_shape) -> q: (B, n_actions) float32."""
    B, in_dim = x.shape
    w1, b1, w2, b2, wc, bc = prepared
    hidden = w1.shape[1]
    n_actions = wc.shape[1]

    tm_eff = _choose_batch_tile(B, tm)
    grid = (pl.cdiv(B, tm_eff),)          # ragged tail handled by edge-block masking

    kernel = functools.partial(
        _offpg_kernel,
        epilogue_in_compute_dtype=_epilogue_in_compute_dtype(w1.dtype))

    # Only raise the scoped-VMEM limit for very large tiles (v5e default is 16 MiB);
    # keep it well under v7x's 64 MiB physical VMEM.
    vmem_limit = 48 * 1024 * 1024 if tm_eff > 1024 else None

    return pl.pallas_call(
        kernel,
        out_shape=jax.ShapeDtypeStruct((B, n_actions), jnp.float32),
        grid=grid,
        in_specs=[
            pl.BlockSpec((tm_eff, in_dim), lambda i: (i, 0)),           # x batch tile
            _const_spec((in_dim, hidden)), _const_spec((1, hidden)),    # fc1
            _const_spec((hidden, hidden)), _const_spec((1, hidden)),    # fc2
            _const_spec((hidden, n_actions)), _const_spec((1, n_actions)),  # fused fc3+fc_v
        ],
        out_specs=pl.BlockSpec((tm_eff, n_actions), lambda i: (i, 0)),
        compiler_params=pltpu.CompilerParams(
            dimension_semantics=("parallel",),
            vmem_limit_bytes=vmem_limit),
    )(x, w1, b1, w2, b2, wc, bc)


# --------------------------------------------------------------------------- #
# Reference / input construction (mirrors the PyTorch module)
# --------------------------------------------------------------------------- #
def init_linear(key, fan_in, fan_out):
    """PyTorch nn.Linear default init: U(-1/sqrt(fan_in), 1/sqrt(fan_in)) for W and b."""
    kw, kb = jax.random.split(key)
    bound = 1.0 / jnp.sqrt(jnp.float32(fan_in))
    w = jax.random.uniform(kw, (fan_in, fan_out), jnp.float32, -bound, bound)
    b = jax.random.uniform(kb, (1, fan_out), jnp.float32, -bound, bound)
    return w, b


def build_inputs(key, bs, max_t, n_agents, state_dim, obs_dim):
    """Mirrors OffPGCritic._build_inputs: [state (repeated per agent), obs, agent one-hot]."""
    ks, ko = jax.random.split(key)
    state = jax.random.normal(ks, (bs, max_t, state_dim), jnp.float32)
    obs = jax.random.normal(ko, (bs, max_t, n_agents, obs_dim), jnp.float32)

    state_rep = jnp.broadcast_to(state[:, :, None, :], (bs, max_t, n_agents, state_dim))
    eye = jnp.broadcast_to(jnp.eye(n_agents, dtype=jnp.float32)[None, None],
                           (bs, max_t, n_agents, n_agents))
    return jnp.concatenate([state_rep, obs, eye], axis=-1)   # (bs, max_t, n_agents, input_shape)


def _reference_forward(x, params):
    """Plain-JAX f32 reference, unfused (matches the PyTorch module exactly)."""
    w1, b1, w2, b2, wv, bv, w3, b3 = params
    hi = jax.lax.Precision.HIGHEST
    h1 = jnp.maximum(jnp.dot(x, w1, precision=hi) + b1, 0.0)
    h2 = jnp.maximum(jnp.dot(h1, w2, precision=hi) + b2, 0.0)
    v = jnp.dot(h2, wv, precision=hi) + bv
    a = jnp.dot(h2, w3, precision=hi) + b3
    return a + v


# --------------------------------------------------------------------------- #
# Demo / self-test
# --------------------------------------------------------------------------- #
if __name__ == "__main__":
    bs, max_t, n_agents, n_actions = 2, 4, 3, 5
    state_dim, obs_dim = 16, 13
    input_shape = state_dim + obs_dim + n_agents      # 32
    hidden = 256

    key = jax.random.PRNGKey(0)
    k_in, k1, k2, kv, k3, k_big = jax.random.split(key, 6)

    inputs = build_inputs(k_in, bs, max_t, n_agents, state_dim, obs_dim)

    w1, b1 = init_linear(k1, input_shape, hidden)
    w2, b2 = init_linear(k2, hidden, hidden)
    wv, bv = init_linear(kv, hidden, 1)
    w3, b3 = init_linear(k3, hidden, n_actions)
    params = (w1, b1, w2, b2, wv, bv, w3, b3)

    # Flatten leading dims (bs, max_t, n_agents) -> batch for the kernel.
    x_flat = inputs.reshape(-1, input_shape)          # (24, 32)
    q_ref = _reference_forward(x_flat, params)

    # f32-operand run: validates fusion / tiling / output-path logic tightly.
    prep_f32 = prepare_params(params, compute_dtype=jnp.float32)
    q_f32 = offpg_critic_forward(x_flat, prep_f32)
    jax.block_until_ready(q_f32)
    assert q_f32.shape == (x_flat.shape[0], n_actions)
    assert jnp.allclose(q_f32, q_ref, atol=5e-3, rtol=5e-3)

    # bf16-operand fast path (default for the v5e/v6e/v7x MXU).
    prep_bf16 = prepare_params(params)                # compute_dtype=bf16
    q_bf16 = offpg_critic_forward(x_flat, prep_bf16)
    jax.block_until_ready(q_bf16)
    assert q_bf16.shape == (x_flat.shape[0], n_actions)
    assert jnp.allclose(q_bf16, q_ref, atol=5e-2, rtol=5e-2)

    # Multi-tile + ragged-batch path (grid of 2 with a partial edge block, no jnp.pad).
    x_big = jax.random.normal(k_big, (300, input_shape), jnp.float32)
    q_big_ref = _reference_forward(x_big, params)
    q_big = offpg_critic_forward(x_big, prep_bf16)
    jax.block_until_ready(q_big)
    assert q_big.shape == (300, n_actions)
    assert jnp.allclose(q_big, q_big_ref, atol=5e-2, rtol=5e-2)

    q = q_bf16.reshape(bs, max_t, n_agents, n_actions)
    jax.block_until_ready(q)

    print("KERNEL_OK")
</pallas_src>

<mosaic_0001>
module attributes {stable_mosaic.version = 11 : i64} {
  func.func @_offpg_kernel(%arg0: i32, %arg1: memref<24x32xf32, #tpu.memory_space<vmem>>, %arg2: memref<32x256xf32, #tpu.memory_space<vmem>>, %arg3: memref<1x256xf32, #tpu.memory_space<vmem>>, %arg4: memref<256x256xf32, #tpu.memory_space<vmem>>, %arg5: memref<1x256xf32, #tpu.memory_space<vmem>>, %arg6: memref<256x5xf32, #tpu.memory_space<vmem>>, %arg7: memref<1x5xf32, #tpu.memory_space<vmem>>, %arg8: memref<24x5xf32, #tpu.memory_space<vmem>>) attributes {dimension_semantics = [#tpu.dimension_semantics<parallel>], iteration_bounds = array<i64: 1>, scalar_prefetch = 0 : i64, scratch_operands = 0 : i64, tpu.core_type = #tpu.core_type<tc>, window_params = [{transform_indices = @transform_0, window_bounds = array<i64: 24, 32>}, {pipeline_mode = #tpu.pipeline_mode<synchronous>, transform_indices = @transform_1, window_bounds = array<i64: 32, 256>}, {pipeline_mode = #tpu.pipeline_mode<synchronous>, transform_indices = @transform_2, window_bounds = array<i64: 1, 256>}, {pipeline_mode = #tpu.pipeline_mode<synchronous>, transform_indices = @transform_3, window_bounds = array<i64: 256, 256>}, {pipeline_mode = #tpu.pipeline_mode<synchronous>, transform_indices = @transform_4, window_bounds = array<i64: 1, 256>}, {pipeline_mode = #tpu.pipeline_mode<synchronous>, transform_indices = @transform_5, window_bounds = array<i64: 256, 5>}, {pipeline_mode = #tpu.pipeline_mode<synchronous>, transform_indices = @transform_6, window_bounds = array<i64: 1, 5>}, {transform_indices = @transform_7, window_bounds = array<i64: 24, 5>}]} {
    %c0 = arith.constant 0 : index
    %c0_0 = arith.constant 0 : index
    %0 = vector.load %arg1[%c0, %c0_0] : memref<24x32xf32, #tpu.memory_space<vmem>>, vector<24x32xf32>
    %c0_1 = arith.constant 0 : index
    %c0_2 = arith.constant 0 : index
    %1 = vector.load %arg2[%c0_1, %c0_2] : memref<32x256xf32, #tpu.memory_space<vmem>>, vector<32x256xf32>
    %cst = arith.constant dense<0.000000e+00> : vector<24x256xf32>
    %2 = tpu.matmul %0, %1, %cst {dimension_numbers = #tpu.dot_dimension_numbers<[1], [0], [0], [1], [0, 0, 1, 1], [], []>} : vector<24x32xf32>, vector<32x256xf32>, vector<24x256xf32> -> vector<24x256xf32>
    %c0_3 = arith.constant 0 : index
    %c0_4 = arith.constant 0 : index
    %3 = vector.load %arg3[%c0_3, %c0_4] : memref<1x256xf32, #tpu.memory_space<vmem>>, vector<1x256xf32>
    %4 = vector.broadcast %3 : vector<1x256xf32> to vector<24x256xf32>
    %5 = arith.addf %2, %4 : vector<24x256xf32>
    %cst_5 = arith.constant 0.000000e+00 : f32
    %6 = vector.broadcast %cst_5 : f32 to vector<24x256xf32>
    %7 = arith.maximumf %5, %6 : vector<24x256xf32>
    %c0_6 = arith.constant 0 : index
    %c0_7 = arith.constant 0 : index
    %8 = vector.load %arg4[%c0_6, %c0_7] : memref<256x256xf32, #tpu.memory_space<vmem>>, vector<256x256xf32>
    %cst_8 = arith.constant dense<0.000000e+00> : vector<24x256xf32>
    %9 = tpu.matmul %7, %8, %cst_8 {dimension_numbers = #tpu.dot_dimension_numbers<[1], [0], [0], [1], [0, 0, 1, 1], [], []>} : vector<24x256xf32>, vector<256x256xf32>, vector<24x256xf32> -> vector<24x256xf32>
    %c0_9 = arith.constant 0 : index
    %c0_10 = arith.constant 0 : index
    %10 = vector.load %arg5[%c0_9, %c0_10] : memref<1x256xf32, #tpu.memory_space<vmem>>, vector<1x256xf32>
    %11 = vector.broadcast %10 : vector<1x256xf32> to vector<24x256xf32>
    %12 = arith.addf %9, %11 : vector<24x256xf32>
    %cst_11 = arith.constant 0.000000e+00 : f32
    %13 = vector.broadcast %cst_11 : f32 to vector<24x256xf32>
    %14 = arith.maximumf %12, %13 : vector<24x256xf32>
    %c0_12 = arith.constant 0 : index
    %c0_13 = arith.constant 0 : index
    %15 = vector.load %arg6[%c0_12, %c0_13] : memref<256x5xf32, #tpu.memory_space<vmem>>, vector<256x5xf32>
    %cst_14 = arith.constant dense<0.000000e+00> : vector<24x5xf32>
    %16 = tpu.matmul %14, %15, %cst_14 {dimension_numbers = #tpu.dot_dimension_numbers<[1], [0], [0], [1], [0, 0, 1, 1], [], []>} : vector<24x256xf32>, vector<256x5xf32>, vector<24x5xf32> -> vector<24x5xf32>
    %c0_15 = arith.constant 0 : index
    %c0_16 = arith.constant 0 : index
    %17 = vector.load %arg7[%c0_15, %c0_16] : memref<1x5xf32, #tpu.memory_space<vmem>>, vector<1x5xf32>
    %18 = vector.broadcast %17 : vector<1x5xf32> to vector<24x5xf32>
    %19 = arith.addf %16, %18 : vector<24x5xf32>
    %c0_17 = arith.constant 0 : index
    %c0_18 = arith.constant 0 : index
    %20 = vector.load %arg8[%c0_17, %c0_18] : memref<24x5xf32, #tpu.memory_space<vmem>>, vector<24x5xf32>
    tpu.vector_store %arg8[%c0_17, %c0_18], %19 {strides = array<i32>} : memref<24x5xf32, #tpu.memory_space<vmem>>, vector<24x5xf32>,
    return
  }
  func.func @transform_0(%arg0: i32) -> (i32, i32) {
    %c0_i32 = arith.constant 0 : i32
    %c0_i32_0 = arith.constant 0 : i32
    return %arg0, %c0_i32 : i32, i32
  }
  func.func @transform_1(%arg0: i32) -> (i32, i32) {
    %c0_i32 = arith.constant 0 : i32
    %c0_i32_0 = arith.constant 0 : i32
    %c0_i32_1 = arith.constant 0 : i32
    return %c0_i32, %c0_i32_0 : i32, i32
  }
  func.func @transform_2(%arg0: i32) -> (i32, i32) {
    %c0_i32 = arith.constant 0 : i32
    %c0_i32_0 = arith.constant 0 : i32
    %c0_i32_1 = arith.constant 0 : i32
    return %c0_i32, %c0_i32_0 : i32, i32
  }
  func.func @transform_3(%arg0: i32) -> (i32, i32) {
    %c0_i32 = arith.constant 0 : i32
    %c0_i32_0 = arith.constant 0 : i32
    %c0_i32_1 = arith.constant 0 : i32
    return %c0_i32, %c0_i32_0 : i32, i32
  }
  func.func @transform_4(%arg0: i32) -> (i32, i32) {
    %c0_i32 = arith.constant 0 : i32
    %c0_i32_0 = arith.constant 0 : i32
    %c0_i32_1 = arith.constant 0 : i32
    return %c0_i32, %c0_i32_0 : i32, i32
  }
  func.func @transform_5(%arg0: i32) -> (i32, i32) {
    %c0_i32 = arith.constant 0 : i32
    %c0_i32_0 = arith.constant 0 : i32
    %c0_i32_1 = arith.constant 0 : i32
    return %c0_i32, %c0_i32_0 : i32, i32
  }
  func.func @transform_6(%arg0: i32) -> (i32, i32) {
    %c0_i32 = arith.constant 0 : i32
    %c0_i32_0 = arith.constant 0 : i32
    %c0_i32_1 = arith.constant 0 : i32
    return %c0_i32, %c0_i32_0 : i32, i32
  }
  func.func @transform_7(%arg0: i32) -> (i32, i32) {
    %c0_i32 = arith.constant 0 : i32
    %c0_i32_0 = arith.constant 0 : i32
    return %arg0, %c0_i32 : i32, i32
  }
}

</mosaic_0001>

<bundles_post_ra>
// kernel: tpu_custom_call.1
= control target key start
LH: loop header
LB: loop body
LE: loop exit
PB: predicated region body
PF: predicated region fallthrough
CT: control target
= control target key end

     0   :  { %12 = vsyncpa [#allocation3], 0  ;;  %s632_s24 = smov [#allocation2]   ;;  %s838_s0 = inlined_call_operand.vmem [shape: f32[24,32], index: 0, kind: input, shape index: {}]   ;;  %s839_s1 = inlined_call_operand.vmem [shape: f32[32,256], index: 1, kind: input, shape index: {}]   ;;  %s840_s2 = inlined_call_operand.vmem [shape: f32[1,256], index: 2, kind: input, shape index: {}]   ;;  %s841_s3 = inlined_call_operand.hbm [shape: f32[256,256], index: 3, kind: input, shape index: {}]   ;;  %s842_s4 = inlined_call_operand.vmem [shape: f32[1,256], index: 4, kind: input, shape index: {}]   ;;  %s843_s5 = inlined_call_operand.vmem [shape: f32[256,5], index: 5, kind: input, shape index: {}]   ;;  %s844_s6 = inlined_call_operand.vmem [shape: f32[1,5], index: 6, kind: input, shape index: {}]   ;;  %s845_s7 = inlined_call_operand.vmem [shape: f32[24,5], index: 7, kind: output, shape index: {}]  }
   0x1   :  { %s24_s25 = sshll.u32 %s632_s24, 4  ;;  %s608_s28 = scalar_lea.hbm %s841_s3, 8192  ;;  %s25_s25 = int_to_ptr.vmem [resolvable:$true] %s24_s25 }
   0x2   :  { %p609_p0 = scmp.ne.s32.totalorder %s841_s3, %s608_s28  ;;  %p612_p1 = scmp.lt.u32.totalorder %s608_s28, %s841_s3 }
   0x4   :  { %p614_p2 = pnand %p612_p1, %p609_p0 }
   0x6   :  { %617 = shalt.err (!%p614_p2)
}
   0x7   :  { %s618_s10 = scalar_lea.vmem %s25_s25, 8192  ;;  %p623_p4 = scmp.lt.s32.totalorder %s25_s25, %s25_s25 }
   0x8   :  { %p619_p3 = scmp.ne.s32.totalorder %s25_s25, %s618_s10  ;;  %p624_p5 = scmp.lt.s32.totalorder %s618_s10, %s618_s10 }
   0xa   :  { %p625_p6 = por %p624_p5, %p623_p4 }
   0xc   :  { %p626_p7 = pnand %p625_p6, %p619_p3 }
   0xe   :  { %629 = shalt.err (!%p626_p7)
}
   0xf   :  { %s633_s11 = smov 256   ;;  %s634_s12 = smov 16  }
  0x10   :  { %30 = dma.hbm_to_vmem [thread:$0]  %s841_s3, 8192, %s25_s25, [#allocation3], %s633_s11, %s633_s11, %s634_s12  }
  0x11   :  { %630 = dma.done.wait [#allocation3], 8192  }
  0x12   :  { %631 = vsyncadd [#allocation3], 4294959104  ;;  %v635_v0 = vmov 0.0   ;;  %v44_v1 = vld [vmem:[%s839_s1 + $0x8] sm:$0xff]  ;;  %v46_v2 = vld [vmem:[%s839_s1 + $0x18] sm:$0xff]  ;;  %vm63_vm0 = vcmask 261120  }
  0x13   :  { %137 = vmatprep.mubr.f32.mxu0 %v635_v0  ;;  %v43_v3 = vld [vmem:[%s839_s1] sm:$0xff]  ;;  %v500_v4 = vpack.c.bf16 %v46_v2, %v44_v1  ;;  %v45_v5 = vld [vmem:[%s839_s1 + $0x10] sm:$0xff]  ;;  %v48_v6 = vld [vmem:[%s839_s1 + $0x28] sm:$0xff]  ;;  %vm446_vm1 = vcmask 39936  }
  0x14   :  { %v50_v7 = vld [vmem:[%s839_s1 + $0x38] sm:$0xff]  ;;  %v502_v8 = vpack.c.bf16 %v45_v5, %v43_v3  ;;  %v47_v10 = vld [vmem:[%s839_s1 + $0x20] sm:$0xff]  ;;  %v49_v11 = vld [vmem:[%s839_s1 + $0x30] sm:$0xff] }
  0x15   :  { %v504_v9 = vpack.c.bf16 %v50_v7, %v48_v6  ;;  %501 = vmatprep.subr.bf16.mxu0 %v500_v4  ;;  %v163_v12 = vld [vmem:[#allocation2 + $0x8] sm:$0xff]  ;;  %v506_v13 = vpack.c.bf16 %v49_v11, %v47_v10  ;;  %v165_v14 = vld [vmem:[#allocation2 + $0x18] sm:$0xff]  ;;  %v162_v15 = vld [vmem:[#allocation2] sm:$0xff] }
  0x16   :  { %503 = vmatpush1.bf16.msra.mxu0 %v502_v8  ;;  %v164_v16 = vld [vmem:[#allocation2 + $0x10] sm:$0xff]  ;;  %v508_v17 = vpack.c.bf16 %v165_v14, %v163_v12  ;;  %v167_v19 = vld [vmem:[#allocation2 + $0x28] sm:$0xff]  ;;  %v169_v20 = vld [vmem:[#allocation2 + $0x38] sm:$0xff] }
  0x17   :  { %505 = vmatprep.subr.bf16.mxu0 %v504_v9  ;;  %v510_v18 = vpack.c.bf16 %v164_v16, %v162_v15  ;;  %v166_v21 = vld [vmem:[#allocation2 + $0x20] sm:$0xff]  ;;  %v512_v22 = vpack.c.bf16 %v169_v20, %v167_v19  ;;  %v168_v23 = vld [vmem:[#allocation2 + $0x30] sm:$0xff]  ;;  %v171_v24 = vld [vmem:[#allocation2 + $0x48] sm:$0xff] }
  0x18   :  { %v173_v25 = vld [vmem:[#allocation2 + $0x58] sm:$0xff]  ;;  %509 = vmatprep.subr.bf16.mxu1 %v508_v17  ;;  %v40_v26 = vld [vmem:[%s838_s0] sm:$0xff]  ;;  %v514_v27 = vpack.c.bf16 %v168_v23, %v166_v21  ;;  %v172_v30 = vld [vmem:[#allocation2 + $0x50] sm:$0xff] }
  0x19   :  { %511 = vmatpush1.bf16.msra.mxu1 %v510_v18  ;;  %v516_v28 = vpack.c.bf16 %v173_v25, %v171_v24  ;;  %v170_v29 = vld [vmem:[#allocation2 + $0x40] sm:$0xff]  ;;  %v175_v31 = vld [vmem:[#allocation2 + $0x68] sm:$0xff]  ;;  %v177_v32 = vld [vmem:[#allocation2 + $0x78] sm:$0xff] }
  0x1a   :  { %507 = vmatpush1.bf16.msra.mxu0 %v506_v13  ;;  %513 = vmatprep.subr.bf16.mxu1 %v512_v22  ;;  %v41_v33 = vld [vmem:[%s838_s0 + $0x8] sm:$0xff]  ;;  %v518_v34 = vpack.c.bf16 %v172_v30, %v170_v29  ;;  %v520_v35 = vpack.c.bf16 %v177_v32, %v175_v31  ;;  %v174_v36 = vld [vmem:[#allocation2 + $0x60] sm:$0xff]  ;;  %v176_v37 = vld [vmem:[#allocation2 + $0x70] sm:$0xff] }
  0x1b   :  { %v179_v38 = vld [vmem:[#allocation2 + $0x88] sm:$0xff]  ;;  %v181_v39 = vld [vmem:[#allocation2 + $0x98] sm:$0xff]  ;;  %v42_v40 = vld [vmem:[%s838_s0 + $0x10] sm:$0xff]  ;;  %v522_v41 = vpack.c.bf16 %v176_v37, %v174_v36 }
  0x1c   :  { %v524_v42 = vpack.c.bf16 %v181_v39, %v179_v38  ;;  %v178_v43 = vld [vmem:[#allocation2 + $0x80] sm:$0xff]  ;;  %v180_v44 = vld [vmem:[#allocation2 + $0x90] sm:$0xff]  ;;  %v183_v45 = vld [vmem:[#allocation2 + $0xa8] sm:$0xff] }
  0x1d   :  { %455 = vmatmul.mubr.msk.f32.vlgmr.msra.gmra.mrb[0].mxu0 %vm63_vm0, %v40_v26  ;;  %515 = vmatpush1.bf16.msra.mxu1 %v514_v27  ;;  %v185_v46 = vld [vmem:[#allocation2 + $0xb8] sm:$0xff]  ;;  %v526_v47 = vpack.c.bf16 %v180_v44, %v178_v43  ;;  %v182_v49 = vld [vmem:[#allocation2 + $0xa0] sm:$0xff]  ;;  %v184_v50 = vld [vmem:[#allocation2 + $0xb0] sm:$0xff] }
  0x1e   :  { %143 = vmatprep.mubr.f32.mxu0 %v635_v0  ;;  %517 = vmatprep.subr.bf16.mxu1 %v516_v28  ;;  %v528_v48 = vpack.c.bf16 %v185_v46, %v183_v45  ;;  %v187_v51 = vld [vmem:[#allocation2 + $0xc8] sm:$0xff]  ;;  %v189_v52 = vld [vmem:[#allocation2 + $0xd8] sm:$0xff]  ;;  %v530_v53 = vpack.c.bf16 %v184_v50, %v182_v49  ;;  %v186_v55 = vld [vmem:[#allocation2 + $0xc0] sm:$0xff] }
  0x1f   :  { %v532_v54 = vpack.c.bf16 %v189_v52, %v187_v51  ;;  %v188_v56 = vld [vmem:[#allocation2 + $0xd0] sm:$0xff]  ;;  %v191_v57 = vld [vmem:[#allocation2 + $0xe8] sm:$0xff]  ;;  %v193_v58 = vld [vmem:[#allocation2 + $0xf8] sm:$0xff] }
  0x20   :  { %v534_v59 = vpack.c.bf16 %v188_v56, %v186_v55  ;;  %v536_v60 = vpack.c.bf16 %v193_v58, %v191_v57  ;;  %v190_v61 = vld [vmem:[#allocation2 + $0xe0] sm:$0xff]  ;;  %v192_v62 = vld [vmem:[#allocation2 + $0xf0] sm:$0xff]  ;;  %v195_v63 = vld [vmem:[#allocation2 + $0x108] sm:$0xff] }
  0x21   :  { %456 = vmatmul.mubr.msk.f32.gmra.mrb[2].mxu0 %vm63_vm0, %v41_v33  ;;  %519 = vmatpush1.bf16.msra.mxu1 %v518_v34  ;;  %v538_v1 = vpack.c.bf16 %v192_v62, %v190_v61  ;;  %v194_v3 = vld [vmem:[#allocation2 + $0x100] sm:$0xff]  ;;  %v196_v4 = vld [vmem:[#allocation2 + $0x110] sm:$0xff]  ;;  %v199_v5 = vld [vmem:[#allocation2 + $0x128] sm:$0xff] }
  0x22   :  { %149 = vmatprep.mubr.f32.mxu0 %v635_v0  ;;  %521 = vmatprep.subr.bf16.mxu1 %v520_v35  ;;  %v197_v0 = vld [vmem:[#allocation2 + $0x118] sm:$0xff]  ;;  %v542_v7 = vpack.c.bf16 %v196_v4, %v194_v3  ;;  %v198_v9 = vld [vmem:[#allocation2 + $0x120] sm:$0xff]  ;;  %v200_v10 = vld [vmem:[#allocation2 + $0x130] sm:$0xff] }
  0x23   :  { %v540_v2 = vpack.c.bf16 %v197_v0, %v195_v63  ;;  %v201_v6 = vld [vmem:[#allocation2 + $0x138] sm:$0xff]  ;;  %v203_v11 = vld [vmem:[#allocation2 + $0x148] sm:$0xff]  ;;  %v546_v13 = vpack.c.bf16 %v200_v10, %v198_v9  ;;  %v202_v15 = vld [vmem:[#allocation2 + $0x140] sm:$0xff] }
  0x24   :  { %v544_v8 = vpack.c.bf16 %v201_v6, %v199_v5  ;;  %v205_v12 = vld [vmem:[#allocation2 + $0x158] sm:$0xff]  ;;  %v204_v16 = vld [vmem:[#allocation2 + $0x150] sm:$0xff]  ;;  %v207_v17 = vld [vmem:[#allocation2 + $0x168] sm:$0xff] }
  0x25   :  { %457 = vmatmul.mubr.msk.f32.gmra.mrb[4].mxu0 %vm63_vm0, %v42_v40  ;;  %523 = vmatpush1.bf16.msra.mxu1 %v522_v41  ;;  %v548_v14 = vpack.c.bf16 %v205_v12, %v203_v11  ;;  %v209_v18 = vld [vmem:[#allocation2 + $0x178] sm:$0xff]  ;;  %v550_v19 = vpack.c.bf16 %v204_v16, %v202_v15  ;;  %v206_v21 = vld [vmem:[#allocation2 + $0x160] sm:$0xff]  ;;  %v208_v22 = vld [vmem:[#allocation2 + $0x170] sm:$0xff] }
  0x26   :  { %525 = vmatprep.subr.bf16.mxu1 %v524_v42  ;;  %v552_v20 = vpack.c.bf16 %v209_v18, %v207_v17  ;;  %v211_v23 = vld [vmem:[#allocation2 + $0x188] sm:$0xff]  ;;  %v213_v24 = vld [vmem:[#allocation2 + $0x198] sm:$0xff]  ;;  %v554_v25 = vpack.c.bf16 %v208_v22, %v206_v21  ;;  %v210_v27 = vld [vmem:[#allocation2 + $0x180] sm:$0xff] }
  0x27   :  { %v556_v26 = vpack.c.bf16 %v213_v24, %v211_v23  ;;  %v212_v28 = vld [vmem:[#allocation2 + $0x190] sm:$0xff]  ;;  %v215_v29 = vld [vmem:[#allocation2 + $0x1a8] sm:$0xff]  ;;  %v217_v30 = vld [vmem:[#allocation2 + $0x1b8] sm:$0xff]  ;;  %v53_v23 = vlaneseq }
  0x28   :  { %v558_v31 = vpack.c.bf16 %v212_v28, %v210_v27  ;;  %v560_v32 = vpack.c.bf16 %v217_v30, %v215_v29  ;;  %v214_v33 = vld [vmem:[#allocation2 + $0x1a0] sm:$0xff]  ;;  %v216_v34 = vld [vmem:[#allocation2 + $0x1b0] sm:$0xff]  ;;  %v219_v35 = vld [vmem:[#allocation2 + $0x1c8] sm:$0xff] }
  0x29   :  { %527 = vmatpush1.bf16.msra.mxu1 %v526_v47  ;;  %v221_v36 = vld [vmem:[#allocation2 + $0x1d8] sm:$0xff]  ;;  %v562_v37 = vpack.c.bf16 %v216_v34, %v214_v33  ;;  %v218_v39 = vld [vmem:[#allocation2 + $0x1c0] sm:$0xff]  ;;  %v220_v40 = vld [vmem:[#allocation2 + $0x1d0] sm:$0xff]  ;;  %v54_v24 = vshrl.u32 %v53_v23, 7 }
  0x2a   :  { %529 = vmatprep.subr.bf16.mxu1 %v528_v48  ;;  %v564_v38 = vpack.c.bf16 %v221_v36, %v219_v35  ;;  %v566_v41 = vpack.c.bf16 %v220_v40, %v218_v39  ;;  %v223_v42 = vld [vmem:[#allocation2 + $0x1e8] sm:$0xff]  ;;  %v225_v43 = vld [vmem:[#allocation2 + $0x1f8] sm:$0xff]  ;;  %v222_v45 = vld [vmem:[#allocation2 + $0x1e0] sm:$0xff] }
  0x2b   :  { %v568_v44 = vpack.c.bf16 %v225_v43, %v223_v42  ;;  %v224_v46 = vld [vmem:[#allocation2 + $0x1f0] sm:$0xff]  ;;  %v343_v48 = vld [vmem:[%s843_s5 + $0x80] sm:$0xff]  ;;  %v344_v49 = vld [vmem:[%s843_s5 + $0x88] sm:$0xff]  ;;  %v59_v27 = vsub.s32 1, %v54_v24 }
  0x2c   :  { %v570_v47 = vpack.c.bf16 %v224_v46, %v222_v45  ;;  %v327_v50 = vld [vmem:[%s843_s5] sm:$0xff]  ;;  %v572_v51 = vpack.c.bf16 %v344_v49, %v343_v48  ;;  %v328_v52 = vld [vmem:[%s843_s5 + $0x8] sm:$0xff]  ;;  %v329_v57 = vld [vmem:[%s843_s5 + $0x10] sm:$0xff] }
  0x2d   :  { %531 = vmatpush1.bf16.msra.mxu1 %v530_v53  ;;  %v345_v53 = vld [vmem:[%s843_s5 + $0x90] sm:$0xff]  ;;  %v574_v55 = vpack.c.bf16 %v328_v52, %v327_v50  ;;  %v330_v58 = vld [vmem:[%s843_s5 + $0x18] sm:$0xff]  ;;  %v331_v63 = vld [vmem:[%s843_s5 + $0x20] sm:$0xff] }
  0x2e   :  { %533 = vmatprep.subr.bf16.mxu1 %v532_v54  ;;  %v346_v54 = vld [vmem:[%s843_s5 + $0x98] sm:$0xff]  ;;  %573 = vmatprep.subr.bf16.mxu0 %v572_v51  ;;  %v578_v61 = vpack.c.bf16 %v330_v58, %v329_v57  ;;  %v332_v0 = vld [vmem:[%s843_s5 + $0x28] sm:$0xff]  ;;  %v333_v5 = vld [vmem:[%s843_s5 + $0x30] sm:$0xff] }
  0x2f   :  { %v576_v56 = vpack.c.bf16 %v346_v54, %v345_v53  ;;  %575 = vmatpush3.bf16.msra.mxu0 %v574_v55  ;;  %v582_v3 = vpack.c.bf16 %v332_v0, %v331_v63  ;;  %v334_v6 = vld [vmem:[%s843_s5 + $0x38] sm:$0xff]  ;;  %v335_v11 = vld [vmem:[%s843_s5 + $0x40] sm:$0xff]  ;;  %v336_v12 = vld [vmem:[%s843_s5 + $0x48] sm:$0xff] }
  0x30   :  { %v586_v9 = vpack.c.bf16 %v334_v6, %v333_v5  ;;  %v590_v15 = vpack.c.bf16 %v336_v12, %v335_v11  ;;  %v337_v17 = vld [vmem:[%s843_s5 + $0x50] sm:$0xff]  ;;  %v338_v18 = vld [vmem:[%s843_s5 + $0x58] sm:$0xff]  ;;  %v339_v48 = vld [vmem:[%s843_s5 + $0x60] sm:$0xff] }
  0x31   :  { %535 = vmatpush1.bf16.msra.mxu1 %v534_v59  ;;  %v347_v59 = vld [vmem:[%s843_s5 + $0xa0] sm:$0xff]  ;;  %577 = vmatprep.subr.bf16.mxu0 %v576_v56  ;;  %v594_v21 = vpack.c.bf16 %v338_v18, %v337_v17  ;;  %v340_v49 = vld [vmem:[%s843_s5 + $0x68] sm:$0xff]  ;;  %v357_v51 = vld [vmem:[%s843_s5 + $0xf0] sm:$0xff] }
  0x32   :  { %537 = vmatprep.subr.bf16.mxu1 %v536_v60  ;;  %v348_v60 = vld [vmem:[%s843_s5 + $0xa8] sm:$0xff]  ;;  %v598_v50 = vpack.c.bf16 %v340_v49, %v339_v48  ;;  %v358_v52 = vld [vmem:[%s843_s5 + $0xf8] sm:$0xff]  ;;  %v341_v54 = vld [vmem:[%s843_s5 + $0x70] sm:$0xff] }
  0x33   :  { %v580_v62 = vpack.c.bf16 %v348_v60, %v347_v59  ;;  %579 = vmatpush3.bf16.msra.mxu0 %v578_v61  ;;  %v600_v53 = vpack.c.bf16 %v358_v52, %v357_v51  ;;  %v342_v55 = vld [vmem:[%s843_s5 + $0x78] sm:$0xff]  ;;  %v226_v57 = vld [vmem:[%s842_s4] sm:$0x3] }
  0x34   :  { %v602_v56 = vpack.c.bf16 %v342_v55, %v341_v54  ;;  %v235_v59 = vrot.slane %v226_v57, %v59_v27 }
  0x35   :  { %539 = vmatpush1.bf16.msra.mxu1 %v538_v1  ;;  %v349_v1 = vld [vmem:[%s843_s5 + $0xb0] sm:$0xff]  ;;  %581 = vmatprep.subr.bf16.mxu0 %v580_v62 }
  0x36   :  { %541 = vmatprep.subr.bf16.mxu1 %v540_v2  ;;  %v350_v2 = vld [vmem:[%s843_s5 + $0xb8] sm:$0xff] }
  0x37   :  { %v584_v4 = vpack.c.bf16 %v350_v2, %v349_v1  ;;  %583 = vmatpush3.bf16.msra.mxu0 %v582_v3 }
  0x39   :  { %543 = vmatpush1.bf16.msra.mxu1 %v542_v7  ;;  %v351_v7 = vld [vmem:[%s843_s5 + $0xc0] sm:$0xff]  ;;  %585 = vmatprep.subr.bf16.mxu0 %v584_v4 }
  0x3a   :  { %545 = vmatprep.subr.bf16.mxu1 %v544_v8  ;;  %v352_v8 = vld [vmem:[%s843_s5 + $0xc8] sm:$0xff] }
  0x3b   :  { %v588_v10 = vpack.c.bf16 %v352_v8, %v351_v7  ;;  %587 = vmatpush3.bf16.msra.mxu0 %v586_v9 }
  0x3d   :  { %547 = vmatpush1.bf16.msra.mxu1 %v546_v13  ;;  %v353_v13 = vld [vmem:[%s843_s5 + $0xd0] sm:$0xff]  ;;  %589 = vmatprep.subr.bf16.mxu0 %v588_v10 }
  0x3e   :  { %549 = vmatprep.subr.bf16.mxu1 %v548_v14  ;;  %v354_v14 = vld [vmem:[%s843_s5 + $0xd8] sm:$0xff] }
  0x3f   :  { %v592_v16 = vpack.c.bf16 %v354_v14, %v353_v13  ;;  %591 = vmatpush3.bf16.msra.mxu0 %v590_v15  ;;  %v458_v15 = vld [vmem:[%s844_s6] ss:$0 sm:$0xff] }
  0x41   :  { %551 = vmatpush1.bf16.msra.mxu1 %v550_v19  ;;  %v355_v19 = vld [vmem:[%s843_s5 + $0xe0] sm:$0xff]  ;;  %593 = vmatprep.subr.bf16.mxu0 %v592_v16 }
  0x42   :  { %553 = vmatprep.subr.bf16.mxu1 %v552_v20  ;;  %v356_v20 = vld [vmem:[%s843_s5 + $0xe8] sm:$0xff] }
  0x43   :  { %v596_v22 = vpack.c.bf16 %v356_v20, %v355_v19  ;;  %595 = vmatpush3.bf16.msra.mxu0 %v594_v21 }
  0x45   :  { %555 = vmatpush1.bf16.msra.mxu1 %v554_v25  ;;  %597 = vmatprep.subr.bf16.mxu0 %v596_v22  ;;  %v55_v25 = vsub.s32 0, %v54_v24 }
  0x46   :  { %557 = vmatprep.subr.bf16.mxu1 %v556_v26  ;;  %v51_v26 = vld [vmem:[%s840_s2] sm:$0x3] }
  0x47   :  { %v56_v28 = vrot.slane %v51_v26, %v55_v25  ;;  %v60_v29 = vrot.slane %v51_v26, %v59_v27  ;;  %599 = vmatpush3.bf16.msra.mxu0 %v598_v50  ;;  %v231_v58 = vrot.slane %v226_v57, %v55_v25 }
  0x48   :  { %601 = vmatprep.subr.bf16.mxu0 %v600_v53 }
  0x49   :  { %559 = vmatpush1.bf16.msra.mxu1 %v558_v31 }
  0x4a   :  { %561 = vmatprep.subr.bf16.mxu1 %v560_v32 }
  0x4b   :  { %603 = vmatpush3.bf16.msra.mxu0 %v602_v56 }
  0x4d   :  { %563 = vmatpush1.bf16.msra.mxu1 %v562_v37 }
  0x4e   :  { %565 = vmatprep.subr.bf16.mxu1 %v564_v38 }
  0x51   :  { %567 = vmatpush1.bf16.msra.mxu1 %v566_v41 }
  0x52   :  { %569 = vmatprep.subr.bf16.mxu1 %v568_v44 }
  0x55   :  { %571 = vmatpush1.bf16.msra.mxu1 %v570_v47 }
  0xf0   :  { %v139_v30 = vpop.f32.mrb[0].mxu0 }
  0xf1   :  { %v140_v31 = vadd.f32 %v139_v30, %v56_v28  ;;  %v141_v32 = vpop.f32.mrb[1].mxu0 }
  0xf2   :  { %v142_v33 = vadd.f32 %v141_v32, %v60_v29 }
  0xf3   :  { %v156_v36 = vmax.f32 %v140_v31, 0.0 }
  0xf4   :  { %v145_v34 = vpop.f32.mrb[2].mxu0  ;;  %v157_v35 = vmax.f32 %v142_v33, 0.0 }
  0xf5   :  { %v146_v37 = vadd.f32 %v145_v34, %v56_v28  ;;  %v147_v38 = vpop.f32.mrb[3].mxu0 }
  0xf6   :  { %v148_v39 = vadd.f32 %v147_v38, %v60_v29  ;;  %302 = vmatprep.mubr.f32.mxu1 %v157_v35 }
  0xf7   :  { %303 = vmatmul.mubr.f32.vlgmr.msra.gmra.mrb[0].mxu1 %v156_v36  ;;  %v158_v42 = vmax.f32 %v146_v37, 0.0 }
  0xf8   :  { %v159_v40 = vmax.f32 %v148_v39, 0.0  ;;  %v151_v41 = vpop.f32.mrb[4].mxu0 }
  0xf9   :  { %v152_v43 = vadd.f32 %v151_v41, %v56_v28  ;;  %v153_v44 = vpop.f32.mrb[5].mxu0 }
  0xfa   :  { %v154_v45 = vadd.f32 %v153_v44, %v60_v29  ;;  %308 = vmatprep.mubr.f32.mxu1 %v159_v40 }
  0xfb   :  { %309 = vmatmul.mubr.f32.gmra.mrb[2].mxu1 %v158_v42  ;;  %v160_v47 = vmax.f32 %v152_v43, 0.0 }
  0xfc   :  { %v161_v46 = vmax.f32 %v154_v45, 0.0 }
  0xfe   :  { %314 = vmatprep.mubr.f32.mxu1 %v161_v46 }
  0xff   :  { %315 = vmatmul.mubr.f32.gmra.mrb[4].mxu1 %v160_v47 }
 0x1ca   :  { %v304_v60 = vpop.f32.mrb[0].mxu1 }
 0x1cb   :  { %v305_v61 = vadd.f32 %v304_v60, %v231_v58  ;;  %v306_v62 = vpop.f32.mrb[1].mxu1 }
 0x1cc   :  { %v307_v63 = vadd.f32 %v306_v62, %v235_v59 }
 0x1cd   :  { %v321_v2 = vmax.f32 %v305_v61, 0.0 }
 0x1ce   :  { %v322_v0 = vmax.f32 %v307_v63, 0.0  ;;  %v310_v1 = vpop.f32.mrb[2].mxu1 }
 0x1cf   :  { %v311_v3 = vadd.f32 %v310_v1, %v231_v58  ;;  %v312_v4 = vpop.f32.mrb[3].mxu1 }
 0x1d0   :  { %v313_v5 = vadd.f32 %v312_v4, %v235_v59  ;;  %430 = vmatprep.mubr.f32.mxu0 %v322_v0 }
 0x1d1   :  { %431 = vmatmul.mubr.f32.vlgmr.msra.gmra.mrb[6].mxu0 %v321_v2  ;;  %v323_v8 = vmax.f32 %v311_v3, 0.0 }
 0x1d2   :  { %v324_v6 = vmax.f32 %v313_v5, 0.0  ;;  %v316_v7 = vpop.f32.mrb[4].mxu1 }
 0x1d3   :  { %v317_v9 = vadd.f32 %v316_v7, %v231_v58  ;;  %v318_v10 = vpop.f32.mrb[5].mxu1 }
 0x1d4   :  { %v319_v11 = vadd.f32 %v318_v10, %v235_v59  ;;  %435 = vmatprep.mubr.f32.mxu0 %v324_v6 }
 0x1d5   :  { %436 = vmatmul.mubr.f32.gmra.mrb[8].mxu0 %v323_v8  ;;  %v325_v13 = vmax.f32 %v317_v9, 0.0 }
 0x1d6   :  { %v326_v12 = vmax.f32 %v319_v11, 0.0 }
 0x1d8   :  { %440 = vmatprep.mubr.f32.mxu0 %v326_v12 }
 0x1d9   :  { %441 = vmatmul.mubr.f32.gmra.mrb[10].mxu0 %v325_v13 }
 0x2a4   :  { %v491_v14 = vpop.f32.mrb[6].mxu0 }
 0x2a5   :  { %v492_v16 = vpop.f32.mrb[7].mxu0 }
 0x2a6   :  { %v493_v17 = vadd.f32 %v492_v16, %v491_v14 }
 0x2a8   :  { %v433_v18 = vadd.f32 %v493_v17, %v458_v15  ;;  %v494_v19 = vpop.f32.mrb[8].mxu0 }
 0x2a9   :  { %v495_v20 = vpop.f32.mrb[9].mxu0 }
 0x2aa   :  { %447 = vst.msk [vmem:[%s845_s7] sm:$0xff] %vm446_vm1, %v433_v18  ;;  %v496_v21 = vadd.f32 %v495_v20, %v494_v19 }
 0x2ac   :  { %v438_v22 = vadd.f32 %v496_v21, %v458_v15  ;;  %v497_v23 = vpop.f32.mrb[10].mxu0 }
 0x2ad   :  { %v498_v24 = vpop.f32.mrb[11].mxu0 }
 0x2ae   :  { %448 = vst.msk [vmem:[%s845_s7 + $0x8] sm:$0xff] %vm446_vm1, %v438_v22  ;;  %v499_v25 = vadd.f32 %v498_v24, %v497_v23 }
 0x2b0   :  { %v443_v26 = vadd.f32 %v499_v25, %v458_v15 }
 0x2b2   :  { %449 = vst.msk [vmem:[%s845_s7 + $0x10] sm:$0xff] %vm446_vm1, %v443_v26 }
 0x2b3   :  { %454 = vsyncpa [#allocation3], 1 }

</bundles_post_ra>
